<compile_context>
chip_gen: v7x
topology: tpu7x:2x2x1
jax: 0.10.0
libtpu: 0.0.40
codegen_flags: <defaults>
</compile_context>

<pallas_src>
import functools

import jax
import jax.numpy as jnp
from jax.experimental import pallas as pl
from jax.experimental.pallas import tpu as pltpu


def _round_up(n, m):
    return ((n + m - 1) // m) * m


def _choose_d_tile(d_pad, fl, w_itemsize, budget_bytes):
    """Largest D tile (multiple of 128, divisor of d_pad) whose codebook block fits budget."""
    m = d_pad // 128
    best = 1
    for g in range(1, m + 1):
        if m % g:
            continue
        n_buf = 1 if g == m else 2   # full codebook is grid-invariant; partial tiles stream
        if 128 * g * fl * w_itemsize * n_buf <= budget_bytes:
            best = g
    return 128 * best


def _choose_batch_tile(batch, f, dt, fl, out_itemsize, w_itemsize, batch_tile):
    if batch_tile is None:
        # Size the batch tile from a VMEM budget rather than a fixed constant:
        # double-buffered x / out tiles + one-hot scratch + f32 temporaries per row.
        per_row = 2 * f * 4 + 2 * dt * out_itemsize + fl * w_itemsize + (fl + dt) * 4
        bt = max(16, min(2048, (8 << 20) // max(per_row, 1)))
    else:
        bt = max(16, int(batch_tile))
    # Keep >= 2 steps on the (parallel) batch axis so v7x's two TensorCores both get work;
    # costs ~nothing on single-TC v5e / v6e.
    if batch > 16:
        bt = min(bt, -(-batch // 2))
    return _round_up(bt, 16)            # bf16 native sublane tiling is (16, 128)


def _codebook_spec(shape, index_map, single_buffer):
    """BlockSpec for the codebook; single-buffer it (pl.Buffered(1)) only when the block is
    grid-invariant AND big enough for the saved VMEM to matter (keeps small configs on the
    default, maximally-compatible pipeline)."""
    if single_buffer and hasattr(pl, "Buffered"):
        try:
            return pl.BlockSpec(shape, index_map, pipeline_mode=pl.Buffered(1))
        except Exception:               # older jax: fall back to default double buffering
            pass
    return pl.BlockSpec(shape, index_map)


def _ngram_kernel(x_ref, expand_ref, w_ref, o_ref, onehot_ref, *,
                  low, high, levels, apply_parity):
    """One (batch-tile, D-tile) grid step.

    x_ref:      (bt, F)   f32       raw features
    expand_ref: (F, FL)   bf16/f32  expand[i, j] = 1 iff lane j is in feature i's level block
    w_ref:      (FL, dt)  bf16/int8 pre-rolled codebook tile ({0,1} for bind, {+-1} for bundle)
    o_ref:      (bt, dt)            output tile
    onehot_ref: (bt, FL)  scratch   one-hot built once per batch tile (j == 0), reused over D
    """
    j = pl.program_id(1)

    @pl.when(j == 0)
    def _build_onehot():
        x = x_ref[...]                                                    # (bt, F)
        tb, f = x.shape
        # 1) quantize each feature to its level index (small integers, exact in f32)
        scale = (levels - 1) / (high - low)
        idx = jnp.clip(jnp.round((x - low) * scale), 0.0, float(levels - 1))
        # 2) flat index into the concatenated codebook: idx + feature * levels
        feat = jax.lax.broadcasted_iota(jnp.int32, (tb, f), 1).astype(jnp.float32)
        flat = idx + feat * float(levels)                                 # (bt, F)
        # 3) broadcast each feature's flat index across its levels-wide lane block with a
        #    tiny matmul against the precomputed expansion matrix (single bf16 MXU pass)
        expand = expand_ref[...]
        q = jnp.dot(flat.astype(expand.dtype), expand,
                    preferred_element_type=jnp.float32)                   # (bt, FL)
        # 4) fused one-hot for all F features at once (integer compare; exact)
        col = jax.lax.broadcasted_iota(jnp.int32, q.shape, 1)
        onehot_ref[...] = (q.astype(jnp.int32) == col).astype(onehot_ref.dtype)

    # 5) single MXU matmul per (batch, D) tile against the pre-rolled codebook
    w = w_ref[...]
    onehot = onehot_ref[...]
    if jnp.issubdtype(w.dtype, jnp.integer):          # int8 MXU path (v5e / v6e, large D)
        s = jnp.dot(onehot, w, preferred_element_type=jnp.int32)
        if apply_parity:                              # bind: prod = 1 - 2 * parity(#(-1))
            s = 1 - 2 * jnp.bitwise_and(s, 1)
        o_ref[...] = s.astype(o_ref.dtype)
    else:                                             # bf16 (all chips) / fp8 (v7x) path
        s = jnp.dot(onehot, w, preferred_element_type=jnp.float32)
        if apply_parity:
            par = jnp.bitwise_and(s.astype(jnp.int32), 1).astype(jnp.float32)
            s = 1.0 - 2.0 * par
        o_ref[...] = s.astype(o_ref.dtype)


class NGramEncoder:
    """Pallas-TPU forward pass for the torchhd-style NGramEncoder (MAP VSA).

    The pre-rolled (F*levels, D) codebook and the (F, F*levels) expansion matrix are built
    once per (n_features, oper) and cached, so the Pallas kernel is the only per-call work.
    """

    def __init__(self, weight, low, high, *, mxu_dtype=jnp.bfloat16):
        # mxu_dtype: bf16 is exact on every generation.  For large D pass jnp.int8 on
        # v5e/v6e (~2x MXU rate) or an fp8 dtype on v7x; {0, 1, +-1} are exact in all of them.
        self.weight = jnp.asarray(weight, jnp.float32)
        self.levels, self.dim = self.weight.shape
        self.low, self.high = float(low), float(high)
        self.mxu_dtype = jnp.dtype(mxu_dtype)
        self._cache = {}

    def _prepared(self, n_features, oper):
        key = (int(n_features), oper)
        if key not in self._cache:
            F, L, D = int(n_features), self.levels, self.dim
            d_pad = _round_up(D, 128)          # lane-dense output tiles (vst, not vst.msk)
            # W_big[i*L + l, :] = roll(weight[l, :], F-1-i)  (roll commutes with the lookup)
            w_big = jnp.concatenate(
                [jnp.roll(self.weight, F - 1 - i, axis=-1) for i in range(F)], axis=0)
            if oper == "bind":
                w_big = (1.0 - w_big) * 0.5    # {+1,-1} -> {0,1}: shared matmul + parity trick
            if d_pad != D:
                w_big = jnp.pad(w_big, ((0, 0), (0, d_pad - D)))
            w_big = w_big.astype(self.mxu_dtype)
            # expand[i, j] = 1 iff lane j lies in feature i's level block; bf16 keeps the
            # flat @ expand dot a single MXU pass and is exact while F*levels <= 256.
            fl = F * L
            r = jnp.arange(F, dtype=jnp.int32)[:, None]
            c = jnp.arange(fl, dtype=jnp.int32)[None, :]
            exp_dtype = jnp.bfloat16 if fl <= 256 else jnp.float32
            expand = ((c >= r * L) & (c < (r + 1) * L)).astype(exp_dtype)
            self._cache[key] = (w_big, expand, d_pad, fl)
        return self._cache[key]

    def __call__(self, x, oper="bind", *, batch_tile=None, out_dtype=None,
                 codebook_vmem_budget_bytes=12 << 20):
        if oper not in ("bind", "bundle"):
            raise ValueError(f"unknown oper: {oper}")
        x = jnp.asarray(x, jnp.float32)
        B, F = x.shape
        w_big, expand, d_pad, fl = self._prepared(F, oper)
        w_isz = jnp.dtype(self.mxu_dtype).itemsize

        if out_dtype is None:
            # bind outputs are +-1 (always exact in bf16); bundle sums are integers with
            # |sum| <= F, exact in bf16 only up to 256 features.
            out_dtype = jnp.bfloat16 if (oper == "bind" or F <= 256) else jnp.float32
        out_isz = jnp.dtype(out_dtype).itemsize

        # ---- tiling -----------------------------------------------------------------
        # D is tiled so the codebook block always fits the VMEM budget (v7x: 64 MiB physical,
        # 32 MiB scoped default).  When it fits whole it stays resident across the grid.
        dt = _choose_d_tile(d_pad, fl, w_isz, int(codebook_vmem_budget_bytes))
        nd = d_pad // dt
        bt = _choose_batch_tile(B, F, dt, fl, out_isz, w_isz, batch_tile)
        b_pad = _round_up(B, bt)
        x_p = jnp.pad(x, ((0, b_pad - B), (0, 0))) if b_pad != B else x
        # TODO(synk): for F >= ~32, feed x transposed as (F, bt) so the batch maps to the
        # 128-lane axis (the (bt, F) tile is lane-sparse for small F; negligible at F=4).

        # ---- VMEM budget / compiler params --------------------------------------------
        cb_resident = nd == 1
        n_cb_buf = 1 if (cb_resident and hasattr(pl, "Buffered")) else 2
        need = (fl * dt * w_isz * n_cb_buf               # codebook block(s)
                + 2 * F * fl * expand.dtype.itemsize     # expansion matrix
                + 2 * bt * F * 4                         # x tiles
                + 2 * bt * dt * out_isz                  # output tiles
                + bt * fl * w_isz                        # one-hot scratch
                + bt * (fl + dt) * 4)                    # f32 temporaries
        try:
            vmem_cap = int(pltpu.get_tpu_info().vmem_capacity_bytes)
        except Exception:
            vmem_cap = 64 << 20                          # v7x physical; safe on every chip
        vmem_limit = int(min(max(need + (8 << 20), 32 << 20), vmem_cap))
        # TODO(synk): if `need` still exceeds physical VMEM (huge F*levels), add a K-tiled
        # reduction over the F*levels axis with an f32 accumulator scratch.

        w_spec = _codebook_spec(
            (fl, dt), lambda i, j: (0, j),
            single_buffer=cb_resident and fl * dt * w_isz > (2 << 20))

        kernel = functools.partial(
            _ngram_kernel, low=self.low, high=self.high, levels=int(self.levels),
            apply_parity=(oper == "bind"))

        out = pl.pallas_call(
            kernel,
            out_shape=jax.ShapeDtypeStruct((b_pad, d_pad), out_dtype),
            grid=(b_pad // bt, nd),
            in_specs=[
                pl.BlockSpec((bt, F), lambda i, j: (i, 0)),   # batch tile (constant in j)
                pl.BlockSpec((F, fl), lambda i, j: (0, 0)),   # expansion matrix (tiny)
                w_spec,                                       # codebook tile
            ],
            out_specs=pl.BlockSpec((bt, dt), lambda i, j: (i, j)),
            scratch_shapes=[pltpu.VMEM((bt, fl), self.mxu_dtype)],   # cached one-hot
            compiler_params=pltpu.CompilerParams(
                dimension_semantics=("parallel", "arbitrary"),
                vmem_limit_bytes=vmem_limit),
            cost_estimate=pl.CostEstimate(
                flops=2 * b_pad * fl * (F + d_pad),
                transcendentals=0,
                bytes_accessed=int(x_p.size * 4
                                   + expand.size * expand.dtype.itemsize
                                   + w_big.size * w_isz * (1 if cb_resident else b_pad // bt)
                                   + b_pad * d_pad * out_isz)),
        )(x_p, expand, w_big)
        return out[:B, :self.dim]


def make_scatter_codebook(key, levels, dim):
    """Deterministic ScatterCode-style init: base +-1 hypervector; each subsequent level flips
    each element of the previous one with probability 1/levels (plain-JAX setup, not forward)."""
    k_base, k_flip = jax.random.split(key)
    base = jnp.where(jax.random.bernoulli(k_base, 0.5, (dim,)), 1.0, -1.0)
    flips = jax.random.bernoulli(k_flip, 1.0 / levels, (levels - 1, dim))
    signs = jnp.cumprod(jnp.where(flips, -1.0, 1.0), axis=0)
    hvs = jnp.concatenate([base[None, :], base[None, :] * signs], axis=0)
    return hvs.astype(jnp.float32)


def ngram_encoder_ref(x, weight, *, low, high, oper):
    """Pure-JAX reference (gather + roll + bind/bundle), mirrors torchhd MAP semantics."""
    levels, _ = weight.shape
    F = x.shape[1]
    scale = (levels - 1) / (high - low)
    idx = jnp.clip(jnp.round((x - low) * scale), 0, levels - 1).astype(jnp.int32)
    hv = weight[idx]                                    # (B, F, D)
    rolled = jnp.stack(
        [jnp.roll(hv[:, i, :], F - 1 - i, axis=-1) for i in range(F)], axis=1)
    return jnp.prod(rolled, axis=1) if oper == "bind" else jnp.sum(rolled, axis=1)


if __name__ == "__main__":
    # Iris-like configuration: 150 samples, 4 features.  D=200 exercises lane padding of the
    # hypervector dimension; the three cases exercise auto/explicit batch tiles and D tiling.
    B, F = 150, 4
    LEVELS, D = 16, 200
    LOW, HIGH = 0.0, 8.0

    key = jax.random.PRNGKey(0)
    kx, kw = jax.random.split(key)
    x = jax.random.uniform(kx, (B, F), dtype=jnp.float32, minval=LOW, maxval=HIGH)
    weight = make_scatter_codebook(kw, LEVELS, D)

    enc = NGramEncoder(weight, LOW, HIGH)

    cases = [
        dict(oper="bind"),                                        # auto tile -> 2 batch steps
        dict(oper="bundle", batch_tile=64),                       # explicit tile + batch padding
        dict(oper="bind", codebook_vmem_budget_bytes=16 << 10),   # force D tiling (nd > 1)
    ]
    ok = True
    for case in cases:
        out = jax.block_until_ready(enc(x, **case))
        ref = ngram_encoder_ref(x, weight, low=LOW, high=HIGH, oper=case["oper"])
        if out.shape != (B, D) or not jnp.allclose(
                out.astype(jnp.float32), ref, rtol=1e-5, atol=1e-5):
            ok = False

    print("KERNEL_OK" if ok else "KERNEL_MISMATCH")
</pallas_src>

<mosaic_0001>
module attributes {stable_mosaic.version = 11 : i64} {
  func.func @_ngram_kernel(%arg0: i32, %arg1: i32, %arg2: memref<80x4xf32, #tpu.memory_space<vmem>>, %arg3: memref<4x64xbf16, #tpu.memory_space<vmem>>, %arg4: memref<64x256xbf16, #tpu.memory_space<vmem>>, %arg5: memref<80x256xbf16, #tpu.memory_space<vmem>>, %arg6: memref<80x64xbf16, #tpu.memory_space<vmem>>) attributes {dimension_semantics = [#tpu.dimension_semantics<parallel>, #tpu.dimension_semantics<arbitrary>], iteration_bounds = array<i64: 2, 1>, scalar_prefetch = 0 : i64, scratch_operands = 1 : i64, tpu.core_type = #tpu.core_type<tc>, window_params = [{transform_indices = @transform_0, window_bounds = array<i64: 80, 4>}, {pipeline_mode = #tpu.pipeline_mode<synchronous>, transform_indices = @transform_1, window_bounds = array<i64: 4, 64>}, {transform_indices = @transform_2, window_bounds = array<i64: 64, 256>}, {transform_indices = @transform_3, window_bounds = array<i64: 80, 256>}]} {
    %c0_i32 = arith.constant 0 : i32
    %0 = arith.cmpi eq, %arg1, %c0_i32 : i32
    %1 = arith.extui %0 : i1 to i32
    %c0_i32_0 = arith.constant 0 : i32
    %2 = arith.cmpi ne, %1, %c0_i32_0 : i32
    scf.if %2 {
      %c0_8 = arith.constant 0 : index
      %c0_9 = arith.constant 0 : index
      %16 = vector.load %arg2[%c0_8, %c0_9] : memref<80x4xf32, #tpu.memory_space<vmem>>, vector<80x4xf32>
      %cst_10 = arith.constant 0.000000e+00 : f32
      %17 = vector.broadcast %cst_10 : f32 to vector<80x4xf32>
      %18 = arith.subf %16, %17 : vector<80x4xf32>
      %cst_11 = arith.constant 1.875000e+00 : f32
      %19 = vector.broadcast %cst_11 : f32 to vector<80x4xf32>
      %20 = arith.mulf %18, %19 : vector<80x4xf32>
      %21 = math.roundeven %20 : vector<80x4xf32>
      %cst_12 = arith.constant 0.000000e+00 : f32
      %cst_13 = arith.constant 1.500000e+01 : f32
      %22 = vector.broadcast %cst_12 : f32 to vector<80x4xf32>
      %23 = arith.maximumf %22, %21 : vector<80x4xf32>
      %24 = vector.broadcast %cst_13 : f32 to vector<80x4xf32>
      %25 = arith.minimumf %24, %23 : vector<80x4xf32>
      %26 = tpu.iota {dimensions = array<i32: 1>} : vector<80x4xi32>
      %27 = arith.sitofp %26 : vector<80x4xi32> to vector<80x4xf32>
      %cst_14 = arith.constant 1.600000e+01 : f32
      %28 = vector.broadcast %cst_14 : f32 to vector<80x4xf32>
      %29 = arith.mulf %27, %28 : vector<80x4xf32>
      %30 = arith.addf %25, %29 : vector<80x4xf32>
      %c0_15 = arith.constant 0 : index
      %c0_16 = arith.constant 0 : index
      %31 = vector.load %arg3[%c0_15, %c0_16] : memref<4x64xbf16, #tpu.memory_space<vmem>>, vector<4x64xbf16>
      %32 = arith.truncf %30 : vector<80x4xf32> to vector<80x4xbf16>
      %cst_17 = arith.constant dense<0.000000e+00> : vector<80x64xf32>
      %33 = tpu.matmul %32, %31, %cst_17 {dimension_numbers = #tpu.dot_dimension_numbers<[1], [0], [0], [1], [0, 0, 1, 1], [], []>} : vector<80x4xbf16>, vector<4x64xbf16>, vector<80x64xf32> -> vector<80x64xf32>
      %34 = tpu.iota {dimensions = array<i32: 1>} : vector<80x64xi32>
      %35 = arith.fptosi %33 : vector<80x64xf32> to vector<80x64xi32>
      %36 = arith.cmpi eq, %35, %34 : vector<80x64xi32>
      %37 = arith.extui %36 : vector<80x64xi1> to vector<80x64xi32>
      %38 = arith.sitofp %37 : vector<80x64xi32> to vector<80x64xf32>
      %39 = arith.truncf %38 : vector<80x64xf32> to vector<80x64xbf16>
      %c0_18 = arith.constant 0 : index
      %c0_19 = arith.constant 0 : index
      %40 = vector.load %arg6[%c0_18, %c0_19] : memref<80x64xbf16, #tpu.memory_space<vmem>>, vector<80x64xbf16>
      tpu.vector_store %arg6[%c0_18, %c0_19], %39 {strides = array<i32>} : memref<80x64xbf16, #tpu.memory_space<vmem>>, vector<80x64xbf16>,
    } else {
    }
    %c0 = arith.constant 0 : index
    %c0_1 = arith.constant 0 : index
    %3 = vector.load %arg4[%c0, %c0_1] : memref<64x256xbf16, #tpu.memory_space<vmem>>, vector<64x256xbf16>
    %c0_2 = arith.constant 0 : index
    %c0_3 = arith.constant 0 : index
    %4 = vector.load %arg6[%c0_2, %c0_3] : memref<80x64xbf16, #tpu.memory_space<vmem>>, vector<80x64xbf16>
    %cst = arith.constant dense<0.000000e+00> : vector<80x256xf32>
    %5 = tpu.matmul %4, %3, %cst {dimension_numbers = #tpu.dot_dimension_numbers<[1], [0], [0], [1], [0, 0, 1, 1], [], []>} : vector<80x64xbf16>, vector<64x256xbf16>, vector<80x256xf32> -> vector<80x256xf32>
    %6 = arith.fptosi %5 : vector<80x256xf32> to vector<80x256xi32>
    %c1_i32 = arith.constant 1 : i32
    %7 = vector.broadcast %c1_i32 : i32 to vector<80x256xi32>
    %8 = arith.andi %6, %7 : vector<80x256xi32>
    %9 = arith.sitofp %8 : vector<80x256xi32> to vector<80x256xf32>
    %cst_4 = arith.constant 2.000000e+00 : f32
    %10 = vector.broadcast %cst_4 : f32 to vector<80x256xf32>
    %11 = arith.mulf %10, %9 : vector<80x256xf32>
    %cst_5 = arith.constant 1.000000e+00 : f32
    %12 = vector.broadcast %cst_5 : f32 to vector<80x256xf32>
    %13 = arith.subf %12, %11 : vector<80x256xf32>
    %14 = arith.truncf %13 : vector<80x256xf32> to vector<80x256xbf16>
    %c0_6 = arith.constant 0 : index
    %c0_7 = arith.constant 0 : index
    %15 = vector.load %arg5[%c0_6, %c0_7] : memref<80x256xbf16, #tpu.memory_space<vmem>>, vector<80x256xbf16>
    tpu.vector_store %arg5[%c0_6, %c0_7], %14 {strides = array<i32>} : memref<80x256xbf16, #tpu.memory_space<vmem>>, vector<80x256xbf16>,
    return
  }
  func.func @transform_0(%arg0: i32, %arg1: i32) -> (i32, i32) {
    %c0_i32 = arith.constant 0 : i32
    %c0_i32_0 = arith.constant 0 : i32
    return %arg0, %c0_i32 : i32, i32
  }
  func.func @transform_1(%arg0: i32, %arg1: i32) -> (i32, i32) {
    %c0_i32 = arith.constant 0 : i32
    %c0_i32_0 = arith.constant 0 : i32
    %c0_i32_1 = arith.constant 0 : i32
    return %c0_i32, %c0_i32_0 : i32, i32
  }
  func.func @transform_2(%arg0: i32, %arg1: i32) -> (i32, i32) {
    %c0_i32 = arith.constant 0 : i32
    %c0_i32_0 = arith.constant 0 : i32
    return %c0_i32, %arg1 : i32, i32
  }
  func.func @transform_3(%arg0: i32, %arg1: i32) -> (i32, i32) {
    %c0_i32 = arith.constant 0 : i32
    return %arg0, %arg1 : i32, i32
  }
}

</mosaic_0001>

<bundles_post_ra>
// kernel: tpu_custom_call.1
= control target key start
LH: loop header
LB: loop body
LE: loop exit
PB: predicated region body
PF: predicated region fallthrough
CT: control target
= control target key end

     0   :  { %8 = vsyncpa [#allocation4], 0  ;;  %s1418_s0 = inlined_call_operand.vmem [shape: f32[160,4], index: 0, kind: input, shape index: {}]   ;;  %s1419_s1 = inlined_call_operand.vmem [shape: bf16[4,64], index: 1, kind: input, shape index: {}]   ;;  %s1420_s2 = inlined_call_operand.vmem [shape: bf16[64,256], index: 2, kind: input, shape index: {}]   ;;  %s1421_s3 = inlined_call_operand.hbm [shape: bf16[160,256], index: 3, kind: output, shape index: {}]  }
   0x1   :  { %10 = vsyncpa [#allocation4 + $0x1], 0  ;;  %s1194_s12 = smov 0   ;;  %s1196_s13 = smov 0  }
   0x2   :  { %s1198_s14 = smov 0   ;;  %s1200_s15 = smov 0  }
   0x3   :  { %s1202_s16 = smov 0   ;;  %s1204_s17 = smov 0  }
   0x4 LB: > { %s855_s18 = sadd.s32 4294967295, %s1166_s17   ;;  %s856_s19 = sadd.s32 4294967294, %s1166_s17   ;;  %s1166_s17 = sphi %s1204_s17, %s16_s17   ;;  %s1162_s16 = sphi %s1202_s16, %s1428_s16   ;;  %s1158_s15 = sphi %s1200_s15, %s1427_s15   ;;  %s1154_s14 = sphi %s1198_s14, %s1426_s14   ;;  %s1150_s13 = sphi %s1196_s13, %s1425_s13   ;;  %s1146_s12 = sphi %s1194_s12, %s1424_s12  }
   0x5   : > { %s28_s20 = sadd.s32 1, %s1162_s16  ;;  %s110_s21 = sadd.s32 1, %s1154_s14 }
   0x6   : > { %p30_p0 = scmp.ge.s32.totalorder %s28_s20, 2  ;;  %p120_p1 = scmp.ne.s32.totalorder %s1154_s14, %s1150_s13 }
   0x7   : > { %p121_p2 = scmp.eq.s32.totalorder %s855_s18, 1  ;;  %p126_p3 = scmp.ne.s32.totalorder %s1150_s13, %s1146_s12 }
   0x8   : > { %s1430_s20 = smov (%p30_p0, %s28_s20), 0  ;;  %p127_p5 = scmp.eq.s32.totalorder %s856_s19, 1 }
   0x9   : > { %p1234_p4 = por %p121_p2, %p120_p1  ;;  %s105_s23 = ssub.s32 %s1162_s16, %s1430_s20 }
   0xa   : > { %p860_p6 = scmp.ge.s32.totalorder %s1166_s17, 1  ;;  %p108_p7 = scmp.eq.s32.totalorder %s105_s23, 0 }
   0xb   : > { %p1241_p8 = por %p127_p5, %p126_p3  ;;  %p166_p9 = scmp.lt.s32.totalorder %s1166_s17, 3 }
   0xc   : > { %s1247_s25 = scalar_select %p108_p7, %s1154_s14, %s110_s21  }
   0xd   : > { %p167_p10 = pnand %p860_p6, %p166_p9 }
   0xe   : > { %v278_v0 = vld [vmem:[%s1419_s1] sm:$0x3] (!%p167_p10)  ;;  %vm300_vm0 = vcmask (!%p167_p10), 1041408   ;;  %s195_s28 = smul.u32 (!%p167_p10), 10, %s1158_s15  ;;  %v1168_v1 = vmov (!%p167_p10), 0.0   ;;  %vm1169_vm1 = vmmov (!%p167_p10), 0   ;;  %v264_v3 = vlaneseq (!%p167_p10) }
   0xf   : > { %170 = sbr.rel (%p167_p10) target bundleno = 544 (0x220), region = 32  ;;  %923 = vmatprep.subr.bf16.mxu0 (!%p167_p10), %v1168_v1  ;;  %v302_v2 = vsel (!%p167_p10), %vm300_vm0, %v278_v0, 0  ;;  %925 = vmatprep.mubr.msk.bf16.mxu0 (!%p167_p10), %vm1169_vm1, %v1168_v1  ;;  %vm284_vm2 = vcmask (!%p167_p10), 31744   ;;  %vm422_vm5 = vcmask (!%p167_p10), 523264   ;;  %s1171_s21 = smov (!%p167_p10), [#allocation3]  }
  0x10   : > { %924 = vmatpush3.bf16.msra.mxu0 (!%p167_p10), %v302_v2  ;;  %p196_p11 = scmp.lt.s32.totalorder (!%p167_p10), %s195_s28, 19  ;;  %v1256_v4 = vand.u32 (!%p167_p10), 127, %v264_v3  ;;  %s916_s8 = smul.u32 (!%p167_p10), 1280, %s1158_s15 }
  0x11   : > { %s1092_s23 = sshll.u32 (!%p167_p10), %s1171_s21, 4  ;;  %s1093_s23 = int_to_ptr.vmem [resolvable:$false] %s1092_s23 }
  0x12   : > { %v266_v10 = vcvt.s32.f32 (!%p167_p10), %v1256_v4  ;;  %s1364_s18 = scalar_lea.hbm (!%p167_p10), %s1421_s3, %s916_s8  ;;  %s1094_s26 = scalar_lea.vmem (!%p167_p10), %s1093_s23, 2560 }
  0x14   : > { %v267_v24 = vmul.f32 (!%p167_p10), 16.0, %v266_v10  ;;  %v1076_v10 = vld [vmem:[%s1420_s2 + $0x4] ss:$8 sps:$4 sm:$0xff] (!%p167_p10)  }
  0x15   : > { %497 = vmatprep.subr.bf16.mxu1 (!%p167_p10), %v1076_v10 }
  0x16   : > { %s1432_s28 = smov (!%p196_p11, %s195_s28), 19 }
  0x17   : > { %s861_s29 = sshll.u32 %s1432_s28, 3 }
  0x18   : > { %s1261_s5 = scalar_lea.vmem %s1418_s0, %s861_s29 }
  0x19   : > { %v214_v5 = vld [vmem:[%s1261_s5] sm:$0xff]  ;;  %v215_v6 = vld [vmem:[%s1261_s5 + $0x8] sm:$0xff]  ;;  %v216_v7 = vld [vmem:[%s1261_s5 + $0x10] sm:$0xff] }
  0x1a   : > { %v224_v8 = vmul.f32 1.875, %v214_v5  ;;  %v225_v9 = vmul.f32 1.875, %v215_v6  ;;  %v217_v11 = vld [vmem:[%s1261_s5 + $0x18] sm:$0xff]  ;;  %v226_v12 = vmul.f32 1.875, %v216_v7  ;;  %v218_v13 = vld [vmem:[%s1261_s5 + $0x20] sm:$0xff]  ;;  %v219_v14 = vld [vmem:[%s1261_s5 + $0x28] sm:$0xff] }
  0x1b   : > { %v227_v15 = vmul.f32 1.875, %v217_v11  ;;  %v228_v20 = vmul.f32 1.875, %v218_v13  ;;  %v229_v21 = vmul.f32 1.875, %v219_v14  ;;  %v220_v35 = vld [vmem:[%s1261_s5 + $0x30] sm:$0xff]  ;;  %v221_v36 = vld [vmem:[%s1261_s5 + $0x38] sm:$0xff]  ;;  %v222_v49 = vld [vmem:[%s1261_s5 + $0x40] sm:$0xff] }
  0x1c   : > { %v946_v16 = vround.rtne.f32 %v224_v8  ;;  %v947_v17 = vround.rtne.f32 %v225_v9  ;;  %v948_v18 = vround.rtne.f32 %v226_v12  ;;  %v230_v38 = vmul.f32 1.875, %v220_v35  ;;  %v223_v50 = vld [vmem:[%s1261_s5 + $0x48] sm:$0xff]  ;;  %v1079_v12 = vld [vmem:[%s1420_s2 + $0x14] ss:$8 sps:$4 sm:$0xff]   ;;  %v1081_v13 = vld [vmem:[%s1420_s2 + $0x10] ss:$8 sps:$4 sm:$0xff]  }
  0x1d   : > { %v949_v19 = vround.rtne.f32 %v227_v15  ;;  %v950_v29 = vround.rtne.f32 %v228_v20  ;;  %v951_v30 = vround.rtne.f32 %v229_v21  ;;  %v231_v39 = vmul.f32 1.875, %v221_v36  ;;  %v1078_v11 = vld [vmem:[%s1420_s2] ss:$8 sps:$4 sm:$0xff]   ;;  %v1082_v14 = vld [vmem:[%s1420_s2 + $0x24] ss:$8 sps:$4 sm:$0xff]   ;;  %s192_s5 = sand.u32 1, %s1150_s13  }
  0x1e   : > { %v244_v22 = vmax.f32 %v946_v16, 0.0  ;;  %v245_v23 = vmax.f32 %v947_v17, 0.0  ;;  %v246_v25 = vmax.f32 %v948_v18, 0.0  ;;  %v952_v44 = vround.rtne.f32 %v230_v38  ;;  %498 = vmatpush1.bf16.msra.mxu1 %v1078_v11  ;;  %v1084_v15 = vld [vmem:[%s1420_s2 + $0x20] ss:$8 sps:$4 sm:$0xff]   ;;  %s945_s6 = smul.u32 80, %s192_s5 }
  0x1f   : > { %v247_v26 = vmax.f32 %v949_v19, 0.0  ;;  %v248_v42 = vmax.f32 %v950_v29, 0.0  ;;  %v249_v43 = vmax.f32 %v951_v30, 0.0  ;;  %v953_v45 = vround.rtne.f32 %v231_v39  ;;  %499 = vmatprep.subr.bf16.mxu1 %v1079_v12  ;;  %v1085_v16 = vld [vmem:[%s1420_s2 + $0x34] ss:$8 sps:$4 sm:$0xff]   ;;  %s1372_s15 = scalar_lea.sflag [#allocation4], %s192_s5 }
  0x20   : > { %v254_v27 = vmin.f32 %v244_v22, 15.0  ;;  %v255_v28 = vmin.f32 %v245_v23, 15.0  ;;  %v256_v33 = vmin.f32 %v246_v25, 15.0  ;;  %v250_v51 = vmax.f32 %v952_v44, 0.0  ;;  %v1087_v17 = vld [vmem:[%s1420_s2 + $0x30] ss:$8 sps:$4 sm:$0xff]  }
  0x21   : > { %v257_v34 = vmin.f32 %v247_v26, 15.0  ;;  %v258_v47 = vmin.f32 %v248_v42, 15.0  ;;  %v259_v48 = vmin.f32 %v249_v43, 15.0  ;;  %v251_v52 = vmax.f32 %v953_v45, 0.0  ;;  %s1349_s7 = scalar_lea.vmem [#allocation3], %s945_s6 }
  0x22   : > { %v268_v31 = vadd.f32 %v267_v24, %v254_v27  ;;  %v269_v32 = vadd.f32 %v267_v24, %v255_v28  ;;  %v270_v40 = vadd.f32 %v267_v24, %v256_v33  ;;  %v232_v55 = vmul.f32 1.875, %v222_v49  ;;  %500 = vmatpush1.bf16.msra.mxu1 %v1081_v13  ;;  %s767_s9 = sshll.u32 %s1349_s7, 4  ;;  %s1366_s9 = int_to_ptr.vmem [resolvable:$true] %s767_s9 }
  0x23   : > { %v271_v41 = vadd.f32 %v267_v24, %v257_v34  ;;  %v272_v53 = vadd.f32 %v267_v24, %v258_v47  ;;  %v273_v54 = vadd.f32 %v267_v24, %v259_v48  ;;  %v233_v56 = vmul.f32 1.875, %v223_v50  ;;  %501 = vmatprep.subr.bf16.mxu1 %v1082_v14  ;;  %s1088_s19 = scalar_lea.vmem %s1366_s9, 1280  ;;  %p1095_p1 = scmp.lt.s32.totalorder %s1366_s9, %s1093_s23 }
  0x24   : > { %v279_v37 = vpack.c.bf16 %v269_v32, %v268_v31  ;;  %v260_v57 = vmin.f32 %v250_v51, 15.0  ;;  %v261_v59 = vmin.f32 %v251_v52, 15.0  ;;  %v954_v60 = vround.rtne.f32 %v232_v55  ;;  %p1089_p12 = scmp.ne.s32.totalorder %s1366_s9, %s1088_s19  ;;  %p1096_p2 = scmp.lt.s32.totalorder %s1094_s26, %s1088_s19 }
  0x25   : > { %v280_v46 = vpack.c.bf16 %v271_v41, %v270_v40  ;;  %v281_v58 = vpack.c.bf16 %v273_v54, %v272_v53  ;;  %v955_v61 = vround.rtne.f32 %v233_v56  ;;  %v1170_v18 = vmov 0  }
  0x26   : > { %926 = vmatmul.mubr.msk.bf16.vlgmr.msra.gmra.mrb[0].mxu0 %vm284_vm2, %v279_v37  ;;  %v274_v62 = vadd.f32 %v267_v24, %v260_v57  ;;  %v275_v63 = vadd.f32 %v267_v24, %v261_v59  ;;  %v252_v0 = vmax.f32 %v954_v60, 0.0  ;;  %502 = vmatpush1.bf16.msra.mxu1 %v1084_v15  ;;  %p1090_p13 = pnand %p1089_p12, %p1234_p4  ;;  %p1097_p3 = por %p1096_p2, %p1095_p1 }
  0x27   : > { %929 = vmatprep.mubr.msk.bf16.mxu0 %vm1169_vm1, %v1168_v1  ;;  %v253_v2 = vmax.f32 %v955_v61, 0.0  ;;  %503 = vmatprep.subr.bf16.mxu1 %v1085_v16 }
  0x28   : > { %v282_v3 = vpack.c.bf16 %v275_v63, %v274_v62  ;;  %v262_v5 = vmin.f32 %v252_v0, 15.0  ;;  %529 = vmatprep.mubr.bf16.mxu1 %v1170_v18  ;;  %p1091_p0 = pneg %p1090_p13 }
  0x29   : > { %v263_v6 = vmin.f32 %v253_v2, 15.0 }
  0x2a   : > { %v276_v7 = vadd.f32 %v267_v24, %v262_v5  ;;  %504 = vmatpush1.bf16.msra.mxu1 %v1087_v17  ;;  %p1098_p5 = pnand %p1097_p3, %p1091_p0 }
  0x2b   : > { %v277_v8 = vadd.f32 %v267_v24, %v263_v6 }
  0x2d   : > { %v283_v9 = vpack.c.bf16 %v277_v8, %v276_v7 }
  0x2e   : > { %930 = vmatmul.mubr.msk.bf16.gmra.mrb[4].mxu0 %vm284_vm2, %v280_v46 }
  0x2f   : > { %933 = vmatprep.mubr.msk.bf16.mxu0 %vm1169_vm1, %v1168_v1 }
  0x36   : > { %934 = vmatmul.mubr.msk.bf16.gmra.mrb[8].mxu0 %vm284_vm2, %v281_v58 }
  0x37   : > { %937 = vmatprep.mubr.msk.bf16.mxu0 %vm1169_vm1, %v1168_v1 }
  0x3e   : > { %938 = vmatmul.mubr.msk.bf16.gmra.mrb[12].mxu0 %vm284_vm2, %v282_v3 }
  0x3f   : > { %941 = vmatprep.mubr.msk.bf16.mxu0 %vm1169_vm1, %v1168_v1 }
  0x46   : > { %942 = vmatmul.mubr.msk.bf16.gmra.mrb[16].mxu0 %vm284_vm2, %v283_v9 }
  0xf9   : > { %v338_v19 = vpop.f32.mrb[0].mxu0 }
  0xfa   : > { %v956_v20 = vtrunc.f32 %v338_v19  ;;  %v927_v21 = vpop.f32.mrb[1].mxu0 }
  0xfb   : > { %v341_v22 = vpop.f32.mrb[2].mxu0 }
  0xfc   : > { %v957_v23 = vcvt.f32.s32 %v956_v20  ;;  %v958_v24 = vtrunc.f32 %v341_v22  ;;  %v928_v25 = vpop.f32.mrb[3].mxu0 }
  0xfe   : > { %vm387_vm3 = vcmp.eq.s32.totalorder %v957_v23, %v1256_v4  ;;  %v959_v26 = vcvt.f32.s32 %v958_v24 }
  0xff   : > { %v867_v27 = vsel %vm387_vm3, 1.0, %v1168_v1 }
 0x100   : > { %vm388_vm4 = vcmp.eq.s32.totalorder %v959_v26, %v1256_v4 }
 0x101   : > { %v868_v28 = vsel %vm388_vm4, 1.0, %v1168_v1  ;;  %v346_v29 = vpop.f32.mrb[4].mxu0 }
 0x102   : > { %v417_v30 = vpack.c.bf16 %v868_v28, %v867_v27  ;;  %v960_v31 = vtrunc.f32 %v346_v29  ;;  %v931_v32 = vpop.f32.mrb[5].mxu0 }
 0x103   : > { %v349_v33 = vpop.f32.mrb[6].mxu0 }
 0x104   : > { %423 = vst.msk [vmem:[#allocation2] sm:$0xff] %vm422_vm5, %v417_v30  ;;  %v961_v34 = vcvt.f32.s32 %v960_v31  ;;  %v962_v35 = vtrunc.f32 %v349_v33  ;;  %v932_v36 = vpop.f32.mrb[7].mxu0 }
 0x106   : > { %vm389_vm6 = vcmp.eq.s32.totalorder %v961_v34, %v1256_v4  ;;  %v963_v37 = vcvt.f32.s32 %v962_v35 }
 0x107   : > { %v869_v38 = vsel %vm389_vm6, 1.0, %v1168_v1 }
 0x108   : > { %vm390_vm7 = vcmp.eq.s32.totalorder %v963_v37, %v1256_v4 }
 0x109   : > { %v870_v39 = vsel %vm390_vm7, 1.0, %v1168_v1  ;;  %v354_v40 = vpop.f32.mrb[8].mxu0 }
 0x10a   : > { %v418_v41 = vpack.c.bf16 %v870_v39, %v869_v38  ;;  %v964_v42 = vtrunc.f32 %v354_v40  ;;  %v935_v43 = vpop.f32.mrb[9].mxu0 }
 0x10b   : > { %v357_v44 = vpop.f32.mrb[10].mxu0  ;;  %v436_v45 = vld [vmem:[#allocation2] sm:$0xff] }
 0x10c   : > { %424 = vst.msk [vmem:[#allocation2 + $0x8] sm:$0xff] %vm422_vm5, %v418_v41  ;;  %v965_v46 = vcvt.f32.s32 %v964_v42  ;;  %v966_v47 = vtrunc.f32 %v357_v44  ;;  %v936_v48 = vpop.f32.mrb[11].mxu0  ;;  %885 = vmatmul.mubr.msk.bf16.vlgmr.msra.gmra.mrb[0].mxu1 %vm422_vm5, %v436_v45 }
 0x10d   : > { %539 = vmatprep.mubr.bf16.mxu1 %v1170_v18 }
 0x10e   : > { %vm391_vm8 = vcmp.eq.s32.totalorder %v965_v46, %v1256_v4  ;;  %v967_v49 = vcvt.f32.s32 %v966_v47 }
 0x10f   : > { %v871_v50 = vsel %vm391_vm8, 1.0, %v1168_v1 }
 0x110   : > { %vm392_vm9 = vcmp.eq.s32.totalorder %v967_v49, %v1256_v4 }
 0x111   : > { %v872_v51 = vsel %vm392_vm9, 1.0, %v1168_v1  ;;  %v362_v52 = vpop.f32.mrb[12].mxu0 }
 0x112   : > { %v419_v53 = vpack.c.bf16 %v872_v51, %v871_v50  ;;  %v968_v54 = vtrunc.f32 %v362_v52  ;;  %v939_v55 = vpop.f32.mrb[13].mxu0 }
 0x113   : > { %v365_v56 = vpop.f32.mrb[14].mxu0  ;;  %v437_v57 = vld [vmem:[#allocation2 + $0x8] sm:$0xff] }
 0x114   : > { %425 = vst.msk [vmem:[#allocation2 + $0x10] sm:$0xff] %vm422_vm5, %v419_v53  ;;  %v969_v58 = vcvt.f32.s32 %v968_v54  ;;  %v970_v59 = vtrunc.f32 %v365_v56  ;;  %v940_v60 = vpop.f32.mrb[15].mxu0  ;;  %886 = vmatmul.mubr.msk.bf16.gmra.mrb[4].mxu1 %vm422_vm5, %v437_v57 }
 0x115   : > { %549 = vmatprep.mubr.bf16.mxu1 %v1170_v18 }
 0x116   : > { %vm393_vm10 = vcmp.eq.s32.totalorder %v969_v58, %v1256_v4  ;;  %v971_v61 = vcvt.f32.s32 %v970_v59 }
 0x117   : > { %v873_v62 = vsel %vm393_vm10, 1.0, %v1168_v1 }
 0x118   : > { %vm394_vm11 = vcmp.eq.s32.totalorder %v971_v61, %v1256_v4 }
 0x119   : > { %v874_v63 = vsel %vm394_vm11, 1.0, %v1168_v1  ;;  %v370_v0 = vpop.f32.mrb[16].mxu0 }
 0x11a   : > { %v420_v2 = vpack.c.bf16 %v874_v63, %v873_v62  ;;  %v972_v3 = vtrunc.f32 %v370_v0  ;;  %v943_v5 = vpop.f32.mrb[17].mxu0 }
 0x11b   : > { %v373_v6 = vpop.f32.mrb[18].mxu0  ;;  %v438_v7 = vld [vmem:[#allocation2 + $0x10] sm:$0xff] }
 0x11c   : > { %426 = vst.msk [vmem:[#allocation2 + $0x18] sm:$0xff] %vm422_vm5, %v420_v2  ;;  %v973_v8 = vcvt.f32.s32 %v972_v3  ;;  %v974_v9 = vtrunc.f32 %v373_v6  ;;  %v944_v10 = vpop.f32.mrb[19].mxu0  ;;  %887 = vmatmul.mubr.msk.bf16.gmra.mrb[8].mxu1 %vm422_vm5, %v438_v7 }
 0x11d   : > { %559 = vmatprep.mubr.bf16.mxu1 %v1170_v18 }
 0x11e   : > { %vm395_vm12 = vcmp.eq.s32.totalorder %v973_v8, %v1256_v4  ;;  %v975_v11 = vcvt.f32.s32 %v974_v9 }
 0x11f   : > { %v875_v12 = vsel %vm395_vm12, 1.0, %v1168_v1 }
 0x120   : > { %vm396_vm13 = vcmp.eq.s32.totalorder %v975_v11, %v1256_v4 }
 0x121   : > { %v876_v13 = vsel %vm396_vm13, 1.0, %v1168_v1 }
 0x122   : > { %v421_v14 = vpack.c.bf16 %v876_v13, %v875_v12 }
 0x123   : > { %v439_v15 = vld [vmem:[#allocation2 + $0x18] sm:$0xff] }
 0x124   : > { %427 = vst.msk [vmem:[#allocation2 + $0x20] sm:$0xff] %vm422_vm5, %v421_v14  ;;  %888 = vmatmul.mubr.msk.bf16.gmra.mrb[12].mxu1 %vm422_vm5, %v439_v15 }
 0x125   : > { %569 = vmatprep.mubr.bf16.mxu1 %v1170_v18 }
 0x12b   : > { %v440_v16 = vld [vmem:[#allocation2 + $0x20] sm:$0xff] }
 0x12c   : > { %889 = vmatmul.mubr.msk.bf16.gmra.mrb[16].mxu1 %vm422_vm5, %v440_v16 }
 0x1df   : > { %v531_v17 = vpop.f32.mrb[0].mxu1 }
 0x1e0   : > { %v976_v19 = vtrunc.f32 %v531_v17  ;;  %v533_v20 = vpop.f32.mrb[1].mxu1 }
 0x1e1   : > { %v978_v4 = vtrunc.f32 %v533_v20  ;;  %v535_v21 = vpop.f32.mrb[2].mxu1 }
 0x1e2   : > { %v977_v22 = vcvt.f32.s32 %v976_v19  ;;  %v980_v1 = vtrunc.f32 %v535_v21  ;;  %v537_v23 = vpop.f32.mrb[3].mxu1 }
 0x1e3   : > { %v979_v24 = vcvt.f32.s32 %v978_v4  ;;  %v982_v25 = vtrunc.f32 %v537_v23 }
 0x1e4   : > { %v600_v26 = vand.u32 1, %v977_v22  ;;  %v981_v27 = vcvt.f32.s32 %v980_v1 }
 0x1e5   : > { %v601_v28 = vand.u32 1, %v979_v24  ;;  %v983_v29 = vcvt.f32.s32 %v982_v25 }
 0x1e6   : > { %v620_v18 = vcvt.s32.f32 %v600_v26  ;;  %v602_v30 = vand.u32 1, %v981_v27 }
 0x1e7   : > { %v621_v31 = vcvt.s32.f32 %v601_v28  ;;  %v603_v32 = vand.u32 1, %v983_v29  ;;  %v541_v33 = vpop.f32.mrb[4].mxu1 }
 0x1e8   : > { %v640_v34 = vmul.f32 2.0, %v620_v18  ;;  %v622_v35 = vcvt.s32.f32 %v602_v30  ;;  %v984_v36 = vtrunc.f32 %v541_v33  ;;  %v543_v37 = vpop.f32.mrb[5].mxu1 }
 0x1e9   : > { %v641_v38 = vmul.f32 2.0, %v621_v31  ;;  %v623_v39 = vcvt.s32.f32 %v603_v32  ;;  %v986_v40 = vtrunc.f32 %v543_v37  ;;  %v545_v41 = vpop.f32.mrb[6].mxu1 }
 0x1ea   : > { %v660_v42 = vsub.f32 1.0, %v640_v34  ;;  %v642_v43 = vmul.f32 2.0, %v622_v35  ;;  %v985_v44 = vcvt.f32.s32 %v984_v36  ;;  %v988_v45 = vtrunc.f32 %v545_v41  ;;  %v547_v46 = vpop.f32.mrb[7].mxu1 }
 0x1eb   : > { %v661_v47 = vsub.f32 1.0, %v641_v38  ;;  %v643_v48 = vmul.f32 2.0, %v623_v39  ;;  %v987_v49 = vcvt.f32.s32 %v986_v40  ;;  %v990_v50 = vtrunc.f32 %v547_v46 }
 0x1ec   : > { %v662_v51 = vsub.f32 1.0, %v642_v43  ;;  %v604_v52 = vand.u32 1, %v985_v44  ;;  %v989_v53 = vcvt.f32.s32 %v988_v45 }
 0x1ed   : > { %v904_v54 = vpack.c.bf16 %v661_v47, %v660_v42  ;;  %v663_v55 = vsub.f32 1.0, %v643_v48  ;;  %v605_v56 = vand.u32 1, %v987_v49  ;;  %v991_v57 = vcvt.f32.s32 %v990_v50 }
 0x1ee   : > { %v624_v58 = vcvt.s32.f32 %v604_v52  ;;  %v606_v59 = vand.u32 1, %v989_v53 }
 0x1ef   : > { %740 = vst [vmem:[%s1349_s7] sm:$0xff] %v904_v54  ;;  %v905_v60 = vpack.c.bf16 %v663_v55, %v662_v51  ;;  %v625_v61 = vcvt.s32.f32 %v605_v56  ;;  %v607_v62 = vand.u32 1, %v991_v57  ;;  %v551_v63 = vpop.f32.mrb[8].mxu1 }
 0x1f0   : > { %v644_v0 = vmul.f32 2.0, %v624_v58  ;;  %v626_v2 = vcvt.s32.f32 %v606_v59  ;;  %v992_v3 = vtrunc.f32 %v551_v63  ;;  %v553_v5 = vpop.f32.mrb[9].mxu1 }
 0x1f1   : > { %741 = vst [vmem:[%s1349_s7 + $0x8] sm:$0xff] %v905_v60  ;;  %v645_v6 = vmul.f32 2.0, %v625_v61  ;;  %v627_v7 = vcvt.s32.f32 %v607_v62  ;;  %v994_v8 = vtrunc.f32 %v553_v5  ;;  %v555_v9 = vpop.f32.mrb[10].mxu1 }
 0x1f2   : > { %v664_v10 = vsub.f32 1.0, %v644_v0  ;;  %v646_v11 = vmul.f32 2.0, %v626_v2  ;;  %v993_v12 = vcvt.f32.s32 %v992_v3  ;;  %v996_v13 = vtrunc.f32 %v555_v9  ;;  %v557_v14 = vpop.f32.mrb[11].mxu1 }
 0x1f3   : > { %v665_v15 = vsub.f32 1.0, %v645_v6  ;;  %v647_v16 = vmul.f32 2.0, %v627_v7  ;;  %v995_v17 = vcvt.f32.s32 %v994_v8  ;;  %v998_v19 = vtrunc.f32 %v557_v14 }
 0x1f4   : > { %v666_v20 = vsub.f32 1.0, %v646_v11  ;;  %v608_v4 = vand.u32 1, %v993_v12  ;;  %v997_v21 = vcvt.f32.s32 %v996_v13 }
 0x1f5   : > { %v906_v22 = vpack.c.bf16 %v665_v15, %v664_v10  ;;  %v667_v1 = vsub.f32 1.0, %v647_v16  ;;  %v609_v23 = vand.u32 1, %v995_v17  ;;  %v999_v24 = vcvt.f32.s32 %v998_v19 }
 0x1f6   : > { %v628_v25 = vcvt.s32.f32 %v608_v4  ;;  %v610_v26 = vand.u32 1, %v997_v21 }
 0x1f7   : > { %742 = vst [vmem:[%s1349_s7 + $0x10] sm:$0xff] %v906_v22  ;;  %v907_v27 = vpack.c.bf16 %v667_v1, %v666_v20  ;;  %v629_v28 = vcvt.s32.f32 %v609_v23  ;;  %v611_v29 = vand.u32 1, %v999_v24  ;;  %v561_v18 = vpop.f32.mrb[12].mxu1 }
 0x1f8   : > { %v648_v30 = vmul.f32 2.0, %v628_v25  ;;  %v630_v31 = vcvt.s32.f32 %v610_v26  ;;  %v1000_v32 = vtrunc.f32 %v561_v18  ;;  %v563_v33 = vpop.f32.mrb[13].mxu1 }
 0x1f9   : > { %743 = vst [vmem:[%s1349_s7 + $0x18] sm:$0xff] %v907_v27  ;;  %v649_v34 = vmul.f32 2.0, %v629_v28  ;;  %v631_v35 = vcvt.s32.f32 %v611_v29  ;;  %v1002_v36 = vtrunc.f32 %v563_v33  ;;  %v565_v37 = vpop.f32.mrb[14].mxu1 }
 0x1fa   : > { %v668_v38 = vsub.f32 1.0, %v648_v30  ;;  %v650_v39 = vmul.f32 2.0, %v630_v31  ;;  %v1001_v40 = vcvt.f32.s32 %v1000_v32  ;;  %v1004_v41 = vtrunc.f32 %v565_v37  ;;  %v567_v42 = vpop.f32.mrb[15].mxu1 }
 0x1fb   : > { %v669_v43 = vsub.f32 1.0, %v649_v34  ;;  %v651_v44 = vmul.f32 2.0, %v631_v35  ;;  %v1003_v45 = vcvt.f32.s32 %v1002_v36  ;;  %v1006_v46 = vtrunc.f32 %v567_v42 }
 0x1fc   : > { %v670_v47 = vsub.f32 1.0, %v650_v39  ;;  %v612_v48 = vand.u32 1, %v1001_v40  ;;  %v1005_v49 = vcvt.f32.s32 %v1004_v41 }
 0x1fd   : > { %v908_v50 = vpack.c.bf16 %v669_v43, %v668_v38  ;;  %v671_v51 = vsub.f32 1.0, %v651_v44  ;;  %v613_v52 = vand.u32 1, %v1003_v45  ;;  %v1007_v53 = vcvt.f32.s32 %v1006_v46 }
 0x1fe   : > { %v632_v54 = vcvt.s32.f32 %v612_v48  ;;  %v614_v55 = vand.u32 1, %v1005_v49 }
 0x1ff   : > { %744 = vst [vmem:[%s1349_s7 + $0x20] sm:$0xff] %v908_v50  ;;  %v909_v56 = vpack.c.bf16 %v671_v51, %v670_v47  ;;  %v633_v57 = vcvt.s32.f32 %v613_v52  ;;  %v615_v58 = vand.u32 1, %v1007_v53  ;;  %v571_v59 = vpop.f32.mrb[16].mxu1 }
 0x200   : > { %v652_v60 = vmul.f32 2.0, %v632_v54  ;;  %v634_v61 = vcvt.s32.f32 %v614_v55  ;;  %v1008_v62 = vtrunc.f32 %v571_v59  ;;  %v573_v63 = vpop.f32.mrb[17].mxu1 }
 0x201   : > { %745 = vst [vmem:[%s1349_s7 + $0x28] sm:$0xff] %v909_v56  ;;  %v653_v0 = vmul.f32 2.0, %v633_v57  ;;  %v635_v2 = vcvt.s32.f32 %v615_v58  ;;  %v1010_v3 = vtrunc.f32 %v573_v63  ;;  %v575_v5 = vpop.f32.mrb[18].mxu1 }
 0x202   : > { %v672_v6 = vsub.f32 1.0, %v652_v60  ;;  %v654_v7 = vmul.f32 2.0, %v634_v61  ;;  %v1009_v8 = vcvt.f32.s32 %v1008_v62  ;;  %v1012_v9 = vtrunc.f32 %v575_v5  ;;  %v577_v10 = vpop.f32.mrb[19].mxu1 }
 0x203   : > { %v673_v11 = vsub.f32 1.0, %v653_v0  ;;  %v655_v12 = vmul.f32 2.0, %v635_v2  ;;  %v1011_v13 = vcvt.f32.s32 %v1010_v3  ;;  %v1014_v14 = vtrunc.f32 %v577_v10 }
 0x204   : > { %v674_v15 = vsub.f32 1.0, %v654_v7  ;;  %v616_v16 = vand.u32 1, %v1009_v8  ;;  %v1013_v17 = vcvt.f32.s32 %v1012_v9 }
 0x205   : > { %v910_v19 = vpack.c.bf16 %v673_v11, %v672_v6  ;;  %v675_v20 = vsub.f32 1.0, %v655_v12  ;;  %v617_v4 = vand.u32 1, %v1011_v13  ;;  %v1015_v21 = vcvt.f32.s32 %v1014_v14 }
 0x206   : > { %v636_v22 = vcvt.s32.f32 %v616_v16  ;;  %v618_v1 = vand.u32 1, %v1013_v17 }
 0x207   : > { %746 = vst [vmem:[%s1349_s7 + $0x30] sm:$0xff] %v910_v19  ;;  %v911_v23 = vpack.c.bf16 %v675_v20, %v674_v15  ;;  %v637_v24 = vcvt.s32.f32 %v617_v4  ;;  %v619_v25 = vand.u32 1, %v1015_v21 }
 0x208   : > { %v656_v26 = vmul.f32 2.0, %v636_v22  ;;  %v638_v27 = vcvt.s32.f32 %v618_v1 }
 0x209   : > { %747 = vst [vmem:[%s1349_s7 + $0x38] sm:$0xff] %v911_v23  ;;  %v657_v28 = vmul.f32 2.0, %v637_v24  ;;  %v639_v29 = vcvt.s32.f32 %v619_v25 }
 0x20a   : > { %v676_v18 = vsub.f32 1.0, %v656_v26  ;;  %v658_v30 = vmul.f32 2.0, %v638_v27 }
 0x20b   : > { %v677_v31 = vsub.f32 1.0, %v657_v28  ;;  %v659_v32 = vmul.f32 2.0, %v639_v29 }
 0x20c   : > { %v678_v33 = vsub.f32 1.0, %v658_v30 }
 0x20d   : > { %v912_v34 = vpack.c.bf16 %v677_v31, %v676_v18  ;;  %v679_v35 = vsub.f32 1.0, %v659_v32 }
 0x20f   : > { %748 = vst [vmem:[%s1349_s7 + $0x40] sm:$0xff] %v912_v34  ;;  %v913_v36 = vpack.c.bf16 %v679_v35, %v678_v33 }
 0x211   : > { %749 = vst [vmem:[%s1349_s7 + $0x48] sm:$0xff] %v913_v36 }
 0x212   : > { %1101 = shalt.err (!%p1098_p5)
}
 0x213   : > { %s1102_s27 = scalar_lea.hbm %s1364_s18, 1280  ;;  %s1106_s30 = scalar_lea.hbm %s1421_s3, 2560 }
 0x214   : > { %p1103_p6 = scmp.ne.s32.totalorder %s1364_s18, %s1102_s27  ;;  %p1107_p10 = scmp.lt.u32.totalorder %s1364_s18, %s1421_s3 }
 0x215   : > { %p1108_p11 = scmp.lt.u32.totalorder %s1106_s30, %s1102_s27  ;;  %p1110_p13 = scmp.lt.u32.totalorder %s1102_s27, %s1364_s18 }
 0x216   : > { %p1104_p7 = pnand %p1103_p6, %p1234_p4 }
 0x217   : > { %p1109_p12 = por %p1108_p11, %p1107_p10 }
 0x218   : > { %p1105_p9 = pneg %p1104_p7 }
 0x219   : > { %p1111_p0 = por %p1110_p13, %p1109_p12 }
 0x21b   : > { %p1112_p1 = pnand %p1111_p0, %p1105_p9 }
 0x21d   : > { %1115 = shalt.err (!%p1112_p1)
}
 0x21e   : > { %s1172_s6 = smov 128   ;;  %s1173_s7 = smov 8  }
 0x21f   : > { %1016 = dma.vmem_to_hbm [thread:$0]  (%p1234_p4), %s1366_s9, 1280, %s1364_s18, %s1372_s15, %s1172_s6, %s1172_s6, %s1173_s7  }
 0x220 PF: > { %p1022_p2 = scmp.ge.s32.totalorder %s1166_s17, 2  ;;  %s782_s8 = sand.u32 1, %s1146_s12  }
 0x221   : > { %s783_s10 = scalar_lea.sflag [#allocation4], %s782_s8 }
 0x222   : > { %p1019_p3 = pnand %p1022_p2, %p1241_p8 }
 0x224   : > { %1141 = dma.done.wait (!%p1019_p3), %s783_s10, 1280  }
 0x225   : > { %1143 = vsyncadd (!%p1019_p3), %s783_s10, 4294966016  ;;  %s16_s17 = sadd.s32 1, %s1166_s17   ;;  %s1424_s12 = smov %s1150_s13 }
 0x226   : > { %p13_p5 = scmp.ge.s32.totalorder %s16_s17, 4   ;;  %s1425_s13 = smov %s1154_s14 }
 0x227   : > { %s1426_s14 = smov %s1247_s25  ;;  %s1427_s15 = smov %s1162_s16 }
 0x228   : > { %s1428_s16 = smov %s1430_s20  ;;  %15 = sbr.rel (!%p13_p5) target bundleno = 4 (0x4), region = 74 }
 0x22f   :  { %788 = vsyncpa [#allocation4], 1 }
 0x230   :  { %790 = vsyncpa [#allocation4 + $0x1], 1 }

</bundles_post_ra>
